<compile_context>
chip_gen: v7x
topology: tpu7x:2x2x1
jax: 0.10.0
libtpu: 0.0.40
codegen_flags: <defaults>
</compile_context>

<pallas_src>
import math
import functools

import jax
import jax.numpy as jnp
from jax.experimental import pallas as pl
from jax.experimental.pallas import tpu as pltpu


def _vmem_budget_bytes():
    """VMEM request per pallas_call: ~3/4 of physical, capped at 100 MiB.

    v5e/v6e have 128 MiB of VMEM per TensorCore, v7x only 64 MiB; never ask for
    100% of physical (it starves double-buffering / Mosaic scratch).
    """
    phys = 128 * 1024 * 1024
    try:
        info = pltpu.get_tpu_info()
        cap = getattr(info, "vmem_capacity_bytes", None)
        if cap:
            phys = int(cap)
    except Exception:
        pass
    return int(min(phys * 3 // 4, 100 * 1024 * 1024))


def _tile_size(n, cap):
    """Largest divisor of n that is <= cap, preferring multiples of 8."""
    cap = max(1, min(n, int(cap)))
    fallback = 1
    for c in range(cap, 0, -1):
        if n % c:
            continue
        if c % 8 == 0:
            return c
        fallback = max(fallback, c)
    return fallback


# ---------------------------------------------------------------------------
# Kernel 1: row-tiled linear  y = x @ W + b   (fused Q/K/V projection, bf16 MXU)
# ---------------------------------------------------------------------------
def _linear_kernel(x_ref, w_ref, b_ref, o_ref):
    o_ref[...] = (jnp.dot(x_ref[...], w_ref[...],
                          preferred_element_type=jnp.float32)
                  + b_ref[...]).astype(o_ref.dtype)


def fused_linear(x, w, b, out_dtype=jnp.bfloat16):
    M, K = x.shape
    N = w.shape[1]
    budget = _vmem_budget_bytes()
    w_bytes = K * N * w.dtype.itemsize
    tm = _tile_size(M, min(1024, max(8, (budget - w_bytes) // max(1, 32 * K))))
    return pl.pallas_call(
        _linear_kernel,
        out_shape=jax.ShapeDtypeStruct((M, N), out_dtype),
        grid=(M // tm,),
        in_specs=[pl.BlockSpec((tm, K), lambda i: (i, 0)),
                  pl.BlockSpec((K, N), lambda i: (0, 0)),   # weights resident
                  pl.BlockSpec((1, N), lambda i: (0, 0))],
        out_specs=pl.BlockSpec((tm, N), lambda i: (i, 0)),
        compiler_params=pltpu.CompilerParams(
            dimension_semantics=("parallel",),
            vmem_limit_bytes=budget),
    )(x, w, b.reshape(1, N))


# ---------------------------------------------------------------------------
# Kernel 2: graph-rel attention core with fused in-VMEM relation projections.
#   grid = (B, NH, S//TQ); per step the kernel sees one query tile, the full key
#   axis, and two rectangular bf16 graph_rels tiles (normal and index-swapped).
#   key_rel / value_rel are folded, so only the query_rel projection (one bf16
#   (S*TQ,DH)x(DH,DH) matmul) and one u@W_kr^T f32 matmul touch the MXU besides
#   p@v; no rk / rv volumes are ever materialized.
# ---------------------------------------------------------------------------
def _graph_attn_kernel(q_ref, k_ref, v_ref, relsT_ref, rels_ref,
                       wqr_ref, bqr_ref, wkrT_ref, bkr_ref, wvr_ref, bvr_ref,
                       gmask_ref, amask_ref, o_ref, *, scale):
    tq, dh = q_ref.shape
    s = k_ref.shape[0]

    q = q_ref[...].astype(jnp.float32) * scale            # (TQ, DH), scale folded in
    k = k_ref[...].astype(jnp.float32)                    # (S, DH)
    rels = rels_ref[...]                                   # (TQ, S, DH) bf16

    # query_rel projection of the transposed-rel tile; weights pre-scaled by
    # 1/sqrt(DH) in prepare_params, bf16 MXU operands, f32 accumulation.
    rq_t = (jnp.dot(relsT_ref[...].reshape(s * tq, dh), wqr_ref[...],
                    preferred_element_type=jnp.float32)
            + bqr_ref[...]).reshape(s, tq, dh)
    # Per-tile VMEM layout alignment (no HBM swapaxes pass over graph_rels).
    # TODO(synk): on v7x, transpose the raw bf16 relsT tile (half the XLU volume)
    # or restructure so only a 2-D (S,TQ) partial-score slab is transposed.
    rq = pltpu.einshape("kqd->qkd", rq_t)                  # (TQ, S, DH) f32

    # key_rel folded:  scale*(q+rq)·(k+rk) = u·(k+b_kr) + (u @ W_kr^T)·rels
    u = q[:, None, :] + rq                                 # (TQ, S, DH) = scale*(q+rq)
    u_k = jnp.dot(u.reshape(tq * s, dh), wkrT_ref[...],
                  preferred_element_type=jnp.float32).reshape(tq, s, dh)
    kb = k + bkr_ref[...]                                   # (S, DH)
    scores = (jnp.sum(u * kb[None, :, :], axis=-1)
              + jnp.sum(u_k * rels, axis=-1))                # (TQ, S), pre-scaled

    scores = scores * gmask_ref[...] + amask_ref[...]        # mult. graph mask, add. attn mask

    m = jnp.max(scores, axis=-1, keepdims=True)
    e = jnp.exp(scores - m)
    p = e * pl.reciprocal(jnp.sum(e, axis=-1, keepdims=True), approx=True)

    ctx = jnp.dot(p.astype(v_ref.dtype), v_ref[...],
                  preferred_element_type=jnp.float32)         # (TQ, DH) on the MXU
    # value_rel folded after the softmax-weighted reduction (sum_j p == 1):
    #   sum_j p*rv = (sum_j p*rels) @ W_vr + b_vr
    prel = jnp.sum(p[:, :, None] * rels, axis=1)              # (TQ, DH)
    ctx = (ctx
           + jnp.dot(prel, wvr_ref[...], preferred_element_type=jnp.float32)
           + bvr_ref[...])
    o_ref[...] = ctx.astype(o_ref.dtype)


def graph_attention(q, k, v, graph_rels, wqr_s, bqr_s, wkrT, bkr, wvr, bvr,
                    gmask, amask):
    B, NH, S, DH = q.shape
    budget = _vmem_budget_bytes()
    # Working set per grid step ~ 32 * TQ*S*DH bytes (two double-buffered bf16 rel
    # tiles + rq_t / rq / u / u_k f32 intermediates); solve for TQ.
    TQ = _tile_size(S, min(256, max(8, budget // max(1, 32 * S * DH))))
    kern = functools.partial(_graph_attn_kernel, scale=1.0 / math.sqrt(DH))

    q_spec = pl.BlockSpec((None, None, TQ, DH), lambda b, h, i: (b, h, i, 0))
    kv_spec = pl.BlockSpec((None, None, S, DH), lambda b, h, i: (b, h, 0, 0))
    rels_spec = pl.BlockSpec((None, None, TQ, S, DH), lambda b, h, i: (b, h, i, 0, 0))
    # TODO(synk): graph_rels is read twice (row-slab + column-slab). Symmetric
    # (i,j)/(j,i) block-pair tiling with an online softmax would halve that.
    relsT_spec = pl.BlockSpec((None, None, S, TQ, DH), lambda b, h, i: (b, h, 0, i, 0))
    gmask_spec = pl.BlockSpec((None, None, TQ, S), lambda b, h, i: (b, 0, i, 0))
    amask_spec = pl.BlockSpec((None, 1, S), lambda b, h, i: (b, 0, 0))
    cst = lambda shape: pl.BlockSpec(shape, lambda b, h, i: (0, 0))

    return pl.pallas_call(
        kern,
        out_shape=jax.ShapeDtypeStruct((B, NH, S, DH), jnp.bfloat16),
        grid=(B, NH, S // TQ),
        in_specs=[q_spec, kv_spec, kv_spec, relsT_spec, rels_spec,
                  cst((DH, DH)), cst((1, DH)),
                  cst((DH, DH)), cst((1, DH)),
                  cst((DH, DH)), cst((1, DH)),
                  gmask_spec, amask_spec],
        out_specs=q_spec,
        compiler_params=pltpu.CompilerParams(
            dimension_semantics=("parallel", "parallel", "parallel"),
            vmem_limit_bytes=budget),
    )(q, k, v, graph_rels, graph_rels,
      wqr_s, bqr_s.reshape(1, DH), wkrT, bkr.reshape(1, DH),
      wvr, bvr.reshape(1, DH), gmask, amask)


# ---------------------------------------------------------------------------
# Kernel 3: fused SelfOutput + Intermediate + Output, row-tiled, bf16 resident
# weights, f32 residual / LayerNorm math.
#   attn_out = LN(ctx @ Wo + bo + hidden)
#   h        = gelu_new(attn_out @ Wi + bi)
#   out      = LN(h @ Wo2 + bo2 + attn_out)
# ---------------------------------------------------------------------------
def _output_ffn_kernel(ctx_ref, hid_ref, wo_ref, bo_ref, g1_ref, b1_ref,
                       wi_ref, bi_ref, wo2_ref, bo2_ref, g2_ref, b2_ref,
                       out_ref, *, eps):
    def layer_norm(x, g, b):
        mu = jnp.mean(x, axis=-1, keepdims=True)
        var = jnp.mean((x - mu) ** 2, axis=-1, keepdims=True)
        return (x - mu) * jax.lax.rsqrt(var + eps) * g + b

    attn_out = layer_norm(
        jnp.dot(ctx_ref[...], wo_ref[...], preferred_element_type=jnp.float32)
        + bo_ref[...] + hid_ref[...].astype(jnp.float32),
        g1_ref[...], b1_ref[...])

    h = (jnp.dot(attn_out.astype(jnp.bfloat16), wi_ref[...],
                 preferred_element_type=jnp.float32) + bi_ref[...])
    h = 0.5 * h * (1.0 + jnp.tanh(0.7978845608028654 * (h + 0.044715 * h * h * h)))

    out = layer_norm(
        jnp.dot(h.astype(jnp.bfloat16), wo2_ref[...],
                preferred_element_type=jnp.float32)
        + bo2_ref[...] + attn_out,
        g2_ref[...], b2_ref[...])
    out_ref[...] = out.astype(out_ref.dtype)


def output_ffn(ctx, hid, prep, eps):
    M, H = ctx.shape
    I = prep["wi"].shape[1]
    budget = _vmem_budget_bytes()
    w_bytes = 2 * (H * H + 2 * H * I)          # bf16 resident weights
    per_row = 40 * H + 8 * I                   # f32 intermediates + dbl-buffered rows
    # TODO(synk): for very large I the resident-weight scheme overflows VMEM; an
    # I-axis "arbitrary" grid with a VMEM accumulator would be needed there.
    tm = _tile_size(M, min(512, max(8, (budget - w_bytes) // per_row)))
    kern = functools.partial(_output_ffn_kernel, eps=eps)
    row = lambda shape: pl.BlockSpec(shape, lambda i: (i, 0))
    cst = lambda shape: pl.BlockSpec(shape, lambda i: (0, 0))
    return pl.pallas_call(
        kern,
        out_shape=jax.ShapeDtypeStruct((M, H), jnp.float32),
        grid=(M // tm,),
        in_specs=[row((tm, H)), row((tm, H)),
                  cst((H, H)), cst((1, H)), cst((1, H)), cst((1, H)),
                  cst((H, I)), cst((1, I)),
                  cst((I, H)), cst((1, H)), cst((1, H)), cst((1, H))],
        out_specs=row((tm, H)),
        compiler_params=pltpu.CompilerParams(
            dimension_semantics=("parallel",),
            vmem_limit_bytes=budget),
    )(ctx, hid,
      prep["wo"], prep["bo"].reshape(1, H),
      prep["ln1_g"].reshape(1, H), prep["ln1_b"].reshape(1, H),
      prep["wi"], prep["bi"].reshape(1, I),
      prep["wo2"], prep["bo2"].reshape(1, H),
      prep["ln2_g"].reshape(1, H), prep["ln2_b"].reshape(1, H))


# ---------------------------------------------------------------------------
# One-time parameter preparation (hoisted out of the forward pass)
# ---------------------------------------------------------------------------
def prepare_params(params):
    DH = params["wqr"].shape[0]
    scale = 1.0 / math.sqrt(DH)
    bf16 = lambda a: a.astype(jnp.bfloat16)
    f32 = lambda a: a.astype(jnp.float32)
    return dict(
        num_heads=params["num_heads"],
        wqkv=bf16(jnp.concatenate([params["wq"], params["wk"], params["wv"]], axis=1)),
        bqkv=f32(jnp.concatenate([params["bq"], params["bk"], params["bv"]])),
        wqr_s=bf16(params["wqr"] * scale),   # 1/sqrt(DH) folded in
        bqr_s=f32(params["bqr"] * scale),
        wkrT=f32(params["wkr"].T),           # used as u @ W_kr^T (key_rel folded)
        bkr=f32(params["bkr"]),
        wvr=f32(params["wvr"]),              # applied after the p-weighted reduction
        bvr=f32(params["bvr"]),
        wo=bf16(params["wo"]), bo=f32(params["bo"]),
        ln1_g=f32(params["ln1_g"]), ln1_b=f32(params["ln1_b"]),
        wi=bf16(params["wi"]), bi=f32(params["bi"]),
        wo2=bf16(params["wo2"]), bo2=f32(params["bo2"]),
        ln2_g=f32(params["ln2_g"]), ln2_b=f32(params["ln2_b"]),
    )


# ---------------------------------------------------------------------------
# Full TransformerLayer forward (cheap glue in JAX, hot path in Pallas)
# ---------------------------------------------------------------------------
def transformer_layer(prep, hidden, attention_mask, graph_rels, graph_mask,
                      layer_norm_eps=1e-12):
    B, S, H = hidden.shape
    NH = prep["num_heads"]
    DH = H // NH
    M = B * S

    x2 = hidden.reshape(M, H)

    # Fused Q/K/V projection: bf16 MXU, f32 accumulate, bf16 (M, 3H) output.
    qkv = fused_linear(x2.astype(jnp.bfloat16), prep["wqkv"], prep["bqkv"])
    q, k, v = jnp.split(qkv, 3, axis=1)
    # TODO(synk): head-split/merge transposes touch only the small bf16 B*S*H
    # activations (graph_rels never takes an HBM transpose pass); they could be
    # removed entirely by reading q/k/v straight out of the (M,3H) buffer.
    t4 = lambda t: t.reshape(B, S, NH, DH).transpose(0, 2, 1, 3)
    q, k, v = t4(q), t4(k), t4(v)

    # Dominant tensors streamed as bf16 (pass them already in bf16 upstream to
    # avoid even this cast pass); masks stay unbroadcast.
    rels_bf = graph_rels.astype(jnp.bfloat16)                  # (B, NH, S, S, DH)
    gmask = graph_mask.reshape(B, 1, S, S).astype(jnp.bfloat16)
    amask = attention_mask.reshape(B, 1, S).astype(jnp.float32)

    ctx = graph_attention(q, k, v, rels_bf, prep["wqr_s"], prep["bqr_s"],
                          prep["wkrT"], prep["bkr"], prep["wvr"], prep["bvr"],
                          gmask, amask)
    ctx2 = ctx.transpose(0, 2, 1, 3).reshape(M, H)             # merge heads (bf16, small)

    out = output_ffn(ctx2, x2, prep, layer_norm_eps)
    return out.reshape(B, S, H)


# ---------------------------------------------------------------------------
# Plain-JAX f32 reference (for correctness check)
# ---------------------------------------------------------------------------
def reference(params, hidden, attention_mask, graph_rels, graph_mask, eps=1e-12):
    B, S, H = hidden.shape
    NH = params["num_heads"]
    DH = H // NH
    lin = lambda x, w, b: x @ w + b

    def t4(x):
        return x.reshape(B, S, NH, DH).transpose(0, 2, 1, 3)

    q = t4(lin(hidden, params["wq"], params["bq"]))
    k = t4(lin(hidden, params["wk"], params["bk"]))
    v = t4(lin(hidden, params["wv"], params["bv"]))

    rq = lin(jnp.swapaxes(graph_rels, -2, -3), params["wqr"], params["bqr"])
    rk = lin(graph_rels, params["wkr"], params["bkr"])
    rv = lin(graph_rels, params["wvr"], params["bvr"])

    scores = jnp.einsum('bhid,bhjd->bhij', q, k)
    scores = scores + jnp.einsum('bhid,bhijd->bhij', q, rk)
    scores = scores + jnp.einsum('bhijd,bhid->bhij', rq, k)
    scores = scores + jnp.sum(rq * rk, axis=-1)
    scores = scores / math.sqrt(DH)
    scores = scores * graph_mask
    scores = scores + attention_mask
    p = jax.nn.softmax(scores, axis=-1)

    ctx = jnp.einsum('bhij,bhjd->bhid', p, v) + jnp.einsum('bhij,bhijd->bhid', p, rv)
    ctx = ctx.transpose(0, 2, 1, 3).reshape(B, S, H)

    def ln(x, g, b):
        mu = jnp.mean(x, axis=-1, keepdims=True)
        var = jnp.mean((x - mu) ** 2, axis=-1, keepdims=True)
        return (x - mu) / jnp.sqrt(var + eps) * g + b

    attn_out = ln(lin(ctx, params["wo"], params["bo"]) + hidden,
                  params["ln1_g"], params["ln1_b"])
    h = lin(attn_out, params["wi"], params["bi"])
    h = 0.5 * h * (1.0 + jnp.tanh(math.sqrt(2.0 / math.pi) * (h + 0.044715 * h ** 3)))
    out = ln(lin(h, params["wo2"], params["bo2"]) + attn_out,
             params["ln2_g"], params["ln2_b"])
    return out


# ---------------------------------------------------------------------------
# Deterministic parameter init (shapes from the module's __init__)
# ---------------------------------------------------------------------------
def init_params(key, H, NH, I):
    DH = H // NH
    ks = jax.random.split(key, 24)
    w = lambda k, shape, s=0.02: (s * jax.random.normal(k, shape)).astype(jnp.float32)
    return dict(
        num_heads=NH,
        wq=w(ks[0], (H, H)),  bq=w(ks[1], (H,)),
        wk=w(ks[2], (H, H)),  bk=w(ks[3], (H,)),
        wv=w(ks[4], (H, H)),  bv=w(ks[5], (H,)),
        wqr=w(ks[6], (DH, DH)),  bqr=w(ks[7], (DH,)),
        wkr=w(ks[8], (DH, DH)),  bkr=w(ks[9], (DH,)),
        wvr=w(ks[10], (DH, DH)), bvr=w(ks[11], (DH,)),
        wo=w(ks[12], (H, H)), bo=w(ks[13], (H,)),
        ln1_g=(1.0 + 0.01 * jax.random.normal(ks[14], (H,))).astype(jnp.float32),
        ln1_b=w(ks[15], (H,), 0.01),
        wi=w(ks[16], (H, I)), bi=w(ks[17], (I,)),
        wo2=w(ks[18], (I, H)), bo2=w(ks[19], (H,)),
        ln2_g=(1.0 + 0.01 * jax.random.normal(ks[20], (H,))).astype(jnp.float32),
        ln2_b=w(ks[21], (H,), 0.01),
    )


if __name__ == "__main__":
    B, S, H, NH, I = 2, 8, 32, 2, 64
    DH = H // NH

    key = jax.random.PRNGKey(0)
    kp, kx, kr, km = jax.random.split(key, 4)
    params = init_params(kp, H, NH, I)
    prep = prepare_params(params)   # one-time weight prep, hoisted out of forward

    hidden = jax.random.normal(kx, (B, S, H), jnp.float32)
    # graph_rels is bf16-exact so the bf16-streaming kernel and the f32 reference
    # see identical data (only compute rounding differs).
    graph_rels = (0.1 * jax.random.normal(kr, (B, NH, S, S, DH))
                  ).astype(jnp.bfloat16).astype(jnp.float32)
    graph_mask = (jax.random.uniform(km, (B, 1, S, S)) > 0.3).astype(jnp.float32)
    # additive BERT-style mask: last position masked out
    attention_mask = jnp.where(jnp.arange(S)[None, None, None, :] < S - 1, 0.0, -10000.0)
    attention_mask = jnp.broadcast_to(attention_mask, (B, 1, 1, S)).astype(jnp.float32)

    out = transformer_layer(prep, hidden, attention_mask, graph_rels, graph_mask)
    out = jax.block_until_ready(out)

    ref = reference(params, hidden, attention_mask, graph_rels, graph_mask)
    err = float(jnp.max(jnp.abs(out - ref)))
    assert out.shape == (B, S, H)
    assert err < 5e-2, f"max abs diff vs reference: {err}"
    print("KERNEL_OK")
</pallas_src>

<mosaic_0001>
module attributes {stable_mosaic.version = 11 : i64} {
  func.func @_linear_kernel(%arg0: i32, %arg1: memref<16x32xbf16, #tpu.memory_space<vmem>>, %arg2: memref<32x96xbf16, #tpu.memory_space<vmem>>, %arg3: memref<1x96xf32, #tpu.memory_space<vmem>>, %arg4: memref<16x96xbf16, #tpu.memory_space<vmem>>) attributes {dimension_semantics = [#tpu.dimension_semantics<parallel>], iteration_bounds = array<i64: 1>, scalar_prefetch = 0 : i64, scratch_operands = 0 : i64, tpu.core_type = #tpu.core_type<tc>, window_params = [{transform_indices = @transform_0, window_bounds = array<i64: 16, 32>}, {pipeline_mode = #tpu.pipeline_mode<synchronous>, transform_indices = @transform_1, window_bounds = array<i64: 32, 96>}, {pipeline_mode = #tpu.pipeline_mode<synchronous>, transform_indices = @transform_2, window_bounds = array<i64: 1, 96>}, {transform_indices = @transform_3, window_bounds = array<i64: 16, 96>}]} {
    %c0 = arith.constant 0 : index
    %c0_0 = arith.constant 0 : index
    %0 = vector.load %arg1[%c0, %c0_0] : memref<16x32xbf16, #tpu.memory_space<vmem>>, vector<16x32xbf16>
    %c0_1 = arith.constant 0 : index
    %c0_2 = arith.constant 0 : index
    %1 = vector.load %arg2[%c0_1, %c0_2] : memref<32x96xbf16, #tpu.memory_space<vmem>>, vector<32x96xbf16>
    %cst = arith.constant dense<0.000000e+00> : vector<16x96xf32>
    %2 = tpu.matmul %0, %1, %cst {dimension_numbers = #tpu.dot_dimension_numbers<[1], [0], [0], [1], [0, 0, 1, 1], [], []>} : vector<16x32xbf16>, vector<32x96xbf16>, vector<16x96xf32> -> vector<16x96xf32>
    %c0_3 = arith.constant 0 : index
    %c0_4 = arith.constant 0 : index
    %3 = vector.load %arg3[%c0_3, %c0_4] : memref<1x96xf32, #tpu.memory_space<vmem>>, vector<1x96xf32>
    %4 = vector.broadcast %3 : vector<1x96xf32> to vector<16x96xf32>
    %5 = arith.addf %2, %4 : vector<16x96xf32>
    %6 = arith.truncf %5 : vector<16x96xf32> to vector<16x96xbf16>
    %c0_5 = arith.constant 0 : index
    %c0_6 = arith.constant 0 : index
    %7 = vector.load %arg4[%c0_5, %c0_6] : memref<16x96xbf16, #tpu.memory_space<vmem>>, vector<16x96xbf16>
    tpu.vector_store %arg4[%c0_5, %c0_6], %6 {strides = array<i32>} : memref<16x96xbf16, #tpu.memory_space<vmem>>, vector<16x96xbf16>,
    return
  }
  func.func @transform_0(%arg0: i32) -> (i32, i32) {
    %c0_i32 = arith.constant 0 : i32
    %c0_i32_0 = arith.constant 0 : i32
    return %arg0, %c0_i32 : i32, i32
  }
  func.func @transform_1(%arg0: i32) -> (i32, i32) {
    %c0_i32 = arith.constant 0 : i32
    %c0_i32_0 = arith.constant 0 : i32
    %c0_i32_1 = arith.constant 0 : i32
    return %c0_i32, %c0_i32_0 : i32, i32
  }
  func.func @transform_2(%arg0: i32) -> (i32, i32) {
    %c0_i32 = arith.constant 0 : i32
    %c0_i32_0 = arith.constant 0 : i32
    %c0_i32_1 = arith.constant 0 : i32
    return %c0_i32, %c0_i32_0 : i32, i32
  }
  func.func @transform_3(%arg0: i32) -> (i32, i32) {
    %c0_i32 = arith.constant 0 : i32
    %c0_i32_0 = arith.constant 0 : i32
    return %arg0, %c0_i32 : i32, i32
  }
}

</mosaic_0001>

<bundles_post_ra>
// kernel: tpu_custom_call.1
= control target key start
LH: loop header
LB: loop body
LE: loop exit
PB: predicated region body
PF: predicated region fallthrough
CT: control target
= control target key end

     0   :  { %8 = vsyncpa [#allocation3], 0  ;;  %s376_s0 = inlined_call_operand.hbm [shape: bf16[16,32], index: 0, kind: input, shape index: {}]   ;;  %s377_s1 = inlined_call_operand.hbm [shape: bf16[32,96], index: 1, kind: input, shape index: {}]   ;;  %s378_s2 = inlined_call_operand.hbm [shape: f32[1,96], index: 2, kind: input, shape index: {}]   ;;  %s379_s3 = inlined_call_operand.hbm [shape: bf16[16,96], index: 3, kind: output, shape index: {}]  }
   0x1   :  { %9 = vsyncpa [#allocation6], 0 }
   0x2   :  { %10 = vsyncpa [#allocation4], 0  ;;  %s284_s12 = smov [#allocation5]   ;;  %s285_s14 = smov [#allocation2]  }
   0x3   :  { %s28_s13 = sshll.u32 %s284_s12, 4  ;;  %s16_s15 = sshll.u32 %s285_s14, 4  ;;  %s29_s13 = int_to_ptr.vmem [resolvable:$true] %s28_s13  ;;  %s312_s15 = int_to_ptr.vmem [resolvable:$true] %s16_s15 }
   0x4   :  { %s190_s18 = scalar_lea.hbm %s377_s1, 256 }
   0x5   :  { %p191_p0 = scmp.ne.s32.totalorder %s377_s1, %s190_s18  ;;  %p194_p1 = scmp.lt.u32.totalorder %s190_s18, %s377_s1 }
   0x7   :  { %p196_p2 = pnand %p194_p1, %p191_p0 }
   0x9   :  { %199 = shalt.err (!%p196_p2)
}
   0xa   :  { %s200_s23 = scalar_lea.vmem %s29_s13, 256  ;;  %p205_p4 = scmp.lt.s32.totalorder %s29_s13, %s29_s13 }
   0xb   :  { %p201_p3 = scmp.ne.s32.totalorder %s29_s13, %s200_s23  ;;  %p206_p5 = scmp.lt.s32.totalorder %s200_s23, %s200_s23 }
   0xd   :  { %p207_p6 = por %p206_p5, %p205_p4 }
   0xf   :  { %p208_p7 = pnand %p207_p6, %p201_p3 }
  0x11   :  { %211 = shalt.err (!%p208_p7)
}
  0x12   :  { %s286_s24 = smov 64   ;;  %s287_s25 = smov 4  }
  0x13   :  { %34 = dma.hbm_to_vmem [thread:$0]  %s377_s1, 256, %s29_s13, [#allocation6], %s286_s24, %s286_s24, %s287_s25  }
  0x14   :  { %s212_s30 = scalar_lea.hbm %s376_s0, 128 }
  0x15   :  { %p213_p8 = scmp.ne.s32.totalorder %s376_s0, %s212_s30  ;;  %p216_p9 = scmp.lt.u32.totalorder %s212_s30, %s376_s0 }
  0x17   :  { %p218_p10 = pnand %p216_p9, %p213_p8 }
  0x19   :  { %221 = shalt.err (!%p218_p10)
}
  0x1a   :  { %s222_s8 = scalar_lea.vmem %s312_s15, 128  ;;  %p227_p12 = scmp.lt.s32.totalorder %s312_s15, %s312_s15 }
  0x1b   :  { %p223_p11 = scmp.ne.s32.totalorder %s312_s15, %s222_s8  ;;  %p228_p13 = scmp.lt.s32.totalorder %s222_s8, %s222_s8 }
  0x1d   :  { %p229_p0 = por %p228_p13, %p227_p12 }
  0x1f   :  { %p230_p1 = pnand %p229_p0, %p223_p11 }
  0x21   :  { %233 = shalt.err (!%p230_p1)
}
  0x22   :  { %22 = dma.hbm_to_vmem [thread:$0]  %s376_s0, 128, %s312_s15, [#allocation3], %s286_s24, %s286_s24, %s287_s25  }
  0x23   :  { %s288_s10 = smov [#allocation7]   ;;  %s234_s14 = scalar_lea.hbm %s378_s2, 16 }
  0x24   :  { %s41_s11 = sshll.u32 %s288_s10, 4  ;;  %p235_p2 = scmp.ne.s32.totalorder %s378_s2, %s234_s14  ;;  %s42_s11 = int_to_ptr.vmem [resolvable:$true] %s41_s11 }
  0x25   :  { %p238_p3 = scmp.lt.u32.totalorder %s234_s14, %s378_s2 }
  0x27   :  { %p240_p4 = pnand %p238_p3, %p235_p2 }
  0x29   :  { %243 = shalt.err (!%p240_p4)
}
  0x2a   :  { %s244_s20 = scalar_lea.vmem %s42_s11, 16  ;;  %s248_s0 = scalar_lea.vmem %s42_s11, 32 }
  0x2b   :  { %p245_p5 = scmp.ne.s32.totalorder %s42_s11, %s244_s20  ;;  %p249_p6 = scmp.lt.s32.totalorder %s42_s11, %s42_s11 }
  0x2c   :  { %p250_p7 = scmp.lt.s32.totalorder %s248_s0, %s244_s20 }
  0x2e   :  { %p251_p8 = por %p250_p7, %p249_p6 }
  0x30   :  { %p252_p9 = pnand %p251_p8, %p245_p5 }
  0x32   :  { %255 = shalt.err (!%p252_p9)
}
  0x33   :  { %44 = dma.hbm_to_vmem [thread:$0]  %s378_s2, 16, %s42_s11, [#allocation6]  }
  0x34   :  { %278 = dma.done.wait [#allocation3], 128  }
  0x35   :  { %279 = vsyncadd [#allocation3], 4294967168 }
  0x36   :  { %280 = dma.done.wait [#allocation6], 272  }
  0x37   :  { %281 = vsyncadd [#allocation6], 4294967024  ;;  %v289_v0 = vmov 0.0   ;;  %vm290_vm0 = vmmov 0   ;;  %v187_v1 = vld [vmem:[#allocation5] sm:$0xff]   ;;  %v188_v2 = vld [vmem:[#allocation5 + $0x8] sm:$0xff]  }
  0x38   :  { %171 = vmatprep.subr.bf16.mxu0 %v289_v0  ;;  %175 = vmatprep.mubr.msk.bf16.mxu0 %vm290_vm0, %v289_v0  ;;  %v189_v3 = vld [vmem:[#allocation2] sm:$0xff]   ;;  %vm85_vm1 = vcmask 261120   ;;  %v159_v4 = vld [vmem:[#allocation7] ss:$0 sm:$0xff]  ;;  %vm138_vm2 = vcmask 781312   ;;  %s291_s2 = smov [#allocation8]  }
  0x39   :  { %172 = vmatpush3.bf16.msra.mxu0 %v187_v1  ;;  %s146_s22 = sshll.u32 %s291_s2, 4  ;;  %s147_s22 = int_to_ptr.vmem [resolvable:$true] %s146_s22 }
  0x3a   :  { %173 = vmatprep.subr.bf16.mxu0 %v289_v0  ;;  %s256_s23 = scalar_lea.vmem %s147_s22, 128  ;;  %p261_p11 = scmp.lt.s32.totalorder %s147_s22, %s147_s22 }
  0x3b   :  { %p257_p10 = scmp.ne.s32.totalorder %s147_s22, %s256_s23  ;;  %p262_p12 = scmp.lt.s32.totalorder %s256_s23, %s256_s23 }
  0x3d   :  { %174 = vmatpush3.bf16.msra.mxu0 %v188_v2  ;;  %p263_p13 = por %p262_p12, %p261_p11 }
  0x3f   :  { %p264_p0 = pnand %p263_p13, %p257_p10 }
  0x40   :  { %176 = vmatmul.mubr.msk.bf16.vlgmr.msra.gmra.mrb[0].mxu0 %vm85_vm1, %v189_v3 }
 0x113   :  { %v123_v5 = vpop.f32.mrb[0].mxu0 }
 0x114   :  { %v124_v6 = vadd.f32 %v159_v4, %v123_v5  ;;  %v177_v7 = vpop.f32.mrb[1].mxu0 }
 0x115   :  { %v126_v8 = vpop.f32.mrb[2].mxu0 }
 0x116   :  { %v166_v9 = vpack.c.bf16 %v124_v6, %v124_v6  ;;  %v127_v10 = vadd.f32 %v159_v4, %v126_v8  ;;  %v178_v11 = vpop.f32.mrb[3].mxu0 }
 0x118   :  { %v167_v12 = vpack.c.bf16 %v127_v10, %v127_v10  ;;  %139 = vst.msk [vmem:[#allocation8] sm:$0xf] %vm138_vm2, %v166_v9 }
 0x11a   :  { %140 = vst.msk [vmem:[#allocation8 + $0x4] sm:$0xf] %vm138_vm2, %v167_v12 }
 0x11b   :  { %267 = shalt.err (!%p264_p0)
}
 0x11c   :  { %s268_s28 = scalar_lea.hbm %s379_s3, 128 }
 0x11d   :  { %p269_p1 = scmp.ne.s32.totalorder %s379_s3, %s268_s28  ;;  %p272_p2 = scmp.lt.u32.totalorder %s268_s28, %s379_s3 }
 0x11f   :  { %p274_p3 = pnand %p272_p2, %p269_p1 }
 0x121   :  { %277 = shalt.err (!%p274_p3)
}
 0x122   :  { %152 = dma.vmem_to_hbm [thread:$0]  %s147_s22, 128, %s379_s3, [#allocation4], %s286_s24, %s286_s24, %s287_s25  }
 0x123   :  { %282 = dma.done.wait [#allocation4], 128  }
 0x124   :  { %283 = vsyncadd [#allocation4], 4294967168 }
 0x125   :  { %156 = vsyncpa [#allocation3], 1 }
 0x126   :  { %157 = vsyncpa [#allocation6], 1 }
 0x127   :  { %158 = vsyncpa [#allocation4], 1 }

</bundles_post_ra>
